<compile_context>
chip_gen: v5e
topology: v5e:2x2
jax: 0.10.0
libtpu: 0.0.40
codegen_flags: <defaults>
</compile_context>

<pallas_src>
import functools

import jax
import jax.numpy as jnp
from jax import lax
from jax.experimental import pallas as pl
from jax.experimental.pallas import tpu as pltpu


def _basic_block_kernel(x_ref, w1_ref, w2_ref, b1_ref, b2_ref, out_ref,
                        pad_ref, *, H, W):
    """One batch element per grid step.

    x_ref   : (1, C, H*W)        f32 input (flattened NCHW) -- also the residual
    w1_ref  : (C, 9*C)           conv1 weights, BN1 scale folded (bf16)
    w2_ref  : (C, 9*C)           conv2 weights, BN2 scale folded (bf16)
    b1_ref  : (C, 1)             folded BN1 bias (f32)
    b2_ref  : (C, 1)             folded BN2 bias (f32)
    out_ref : (1, C, H*W)        f32 output
    pad_ref : (C, (H+4)*W)       VMEM scratch: [guard | top-pad | H data rows |
                                 bottom-pad | guard] rows, flattened.
    """
    C = x_ref.shape[1]
    HW = H * W
    mxu_dtype = w1_ref.dtype

    # Lane masks realizing the width-padding of the 3x3 conv:
    #   dx == 0 taps are invalid at output column x == 0,
    #   dx == 2 taps are invalid at output column x == W-1.
    col = lax.broadcasted_iota(jnp.int32, (1, HW), 1) % W
    not_left = col != 0
    not_right = col != (W - 1)

    # Refresh the zero border / guard rows every step (cheap: 2 x (C, 2W)).
    # Deliberately NOT gated on program_id==0: the batch axis is "parallel"
    # and may be sharded across TensorCores, each with its own scratch.
    zero_rows = jnp.zeros((C, 2 * W), jnp.float32)
    pad_ref[:, 0:2 * W] = zero_rows
    pad_ref[:, (H + 2) * W:(H + 4) * W] = zero_rows

    def conv3x3_bn(w_ref, b_ref):
        """3x3/pad=1 conv (+ folded BN) of the image currently in pad_ref."""
        blocks = []
        for dy in range(3):
            for dx in range(3):
                start = (dy + 1) * W + dx - 1          # in-bounds thanks to guards
                t = pad_ref[:, start:start + HW]       # (C, HW) contiguous slice
                if dx == 0:
                    t = jnp.where(not_left, t, 0.0)
                elif dx == 2:
                    t = jnp.where(not_right, t, 0.0)
                blocks.append(t)
        patches = jnp.concatenate(blocks, axis=0).astype(mxu_dtype)   # (9C, HW)
        # Single MXU matmul, H*W on the lane axis; accumulate in f32.
        return jnp.dot(w_ref[...], patches,
                       preferred_element_type=jnp.float32) + b_ref[...]

    # Load this image into the row-padded scratch (one contiguous store).
    x = x_ref[0]                                       # (C, HW) f32 residual
    pad_ref[:, 2 * W:2 * W + HW] = x

    # conv1 -> bn1 (folded) -> relu
    y = jnp.maximum(conv3x3_bn(w1_ref, b1_ref), 0.0)

    # Reuse the same scratch for conv2's row-padded input (Cin == Cout).
    pad_ref[:, 2 * W:2 * W + HW] = y

    # conv2 -> bn2 (folded) -> + residual -> relu
    out = jnp.maximum(conv3x3_bn(w2_ref, b2_ref) + x, 0.0)
    out_ref[0] = out.astype(out_ref.dtype)


def basic_block_pallas(x_nchw, w1_oihw, w2_oihw, bn1, bn2, eps=1e-5,
                       mxu_dtype=jnp.bfloat16):
    """Forward pass of BasicBlock (stride=1, downsample=None). NCHW in/out."""
    N, C, H, W = x_nchw.shape
    Cout = w1_oihw.shape[0]
    assert C == Cout, "no-downsample BasicBlock requires inplanes == planes"
    assert w1_oihw.shape == (Cout, C, 3, 3) and w2_oihw.shape == (Cout, Cout, 3, 3)
    HW = H * W

    def fold(w, bn):
        g, b, m, v = bn
        inv = g / jnp.sqrt(v + eps)                                    # (Cout,)
        w_s = w.astype(jnp.float32) * inv[:, None, None, None]          # scale folded
        # OIHW -> (O, kh, kw, I) -> (O, 9*I): matches im2col block order k=kh*3+kw.
        w_mat = jnp.transpose(w_s, (0, 2, 3, 1)).reshape(Cout, 9 * C)
        bias = (b - m * inv).reshape(Cout, 1)
        return w_mat.astype(mxu_dtype), bias.astype(jnp.float32)

    w1m, b1 = fold(w1_oihw, bn1)
    w2m, b2 = fold(w2_oihw, bn2)

    x_flat = x_nchw.astype(jnp.float32).reshape(N, C, HW)   # free reshape, stays NCHW

    kernel = functools.partial(_basic_block_kernel, H=H, W=W)

    out_flat = pl.pallas_call(
        kernel,
        out_shape=jax.ShapeDtypeStruct((N, C, HW), jnp.float32),
        grid_spec=pltpu.PrefetchScalarGridSpec(
            num_scalar_prefetch=0,
            grid=(N,),
            in_specs=[
                pl.BlockSpec((1, C, HW), lambda n: (n, 0, 0)),
                pl.BlockSpec((Cout, 9 * C), lambda n: (0, 0)),
                pl.BlockSpec((Cout, 9 * Cout), lambda n: (0, 0)),
                pl.BlockSpec((Cout, 1), lambda n: (0, 0)),
                pl.BlockSpec((Cout, 1), lambda n: (0, 0)),
            ],
            out_specs=pl.BlockSpec((1, C, HW), lambda n: (n, 0, 0)),
            scratch_shapes=[pltpu.VMEM((C, (H + 4) * W), jnp.float32)],
        ),
        compiler_params=pltpu.CompilerParams(
            dimension_semantics=("parallel",),      # batch across cores (megacore)
            vmem_limit_bytes=32 * 1024 * 1024,
        ),
    )(x_flat, w1m, w2m, b1, b2)

    return out_flat.reshape(N, C, H, W)


def basic_block_ref(x, w1, w2, bn1, bn2, eps=1e-5):
    """Pure-JAX NCHW reference (PyTorch eval-mode semantics), f32-accurate."""
    def conv(t, w):
        return lax.conv_general_dilated(
            t, w, window_strides=(1, 1), padding=((1, 1), (1, 1)),
            dimension_numbers=("NCHW", "OIHW", "NCHW"),
            precision=lax.Precision.HIGHEST)

    def bn(t, p):
        g, b, m, v = (a[None, :, None, None] for a in p)
        return (t - m) / jnp.sqrt(v + eps) * g + b

    out = jax.nn.relu(bn(conv(x, w1), bn1))
    out = bn(conv(out, w2), bn2) + x
    return jax.nn.relu(out)


if __name__ == "__main__":
    key = jax.random.PRNGKey(0)
    kx, kw1, kw2, kg1, kb1, km1, kv1, kg2, kb2, km2, kv2 = jax.random.split(key, 11)

    N, C, H, W = 2, 8, 16, 16          # inplanes = planes = 8, stride = 1
    x = jax.random.normal(kx, (N, C, H, W), jnp.float32)

    w1 = 0.1 * jax.random.normal(kw1, (C, C, 3, 3), jnp.float32)   # OIHW
    w2 = 0.1 * jax.random.normal(kw2, (C, C, 3, 3), jnp.float32)

    bn1 = (jax.random.uniform(kg1, (C,), jnp.float32, 0.5, 1.5),   # gamma
           0.1 * jax.random.normal(kb1, (C,), jnp.float32),        # beta
           0.1 * jax.random.normal(km1, (C,), jnp.float32),        # running_mean
           jax.random.uniform(kv1, (C,), jnp.float32, 0.5, 1.5))   # running_var
    bn2 = (jax.random.uniform(kg2, (C,), jnp.float32, 0.5, 1.5),
           0.1 * jax.random.normal(kb2, (C,), jnp.float32),
           0.1 * jax.random.normal(km2, (C,), jnp.float32),
           jax.random.uniform(kv2, (C,), jnp.float32, 0.5, 1.5))

    out = jax.block_until_ready(basic_block_pallas(x, w1, w2, bn1, bn2))
    ref = jax.block_until_ready(basic_block_ref(x, w1, w2, bn1, bn2))

    assert out.shape == (N, C, H, W), out.shape
    # bf16 MXU inputs (two stacked 3x3 convs) -> relaxed tolerance vs f32 ref.
    max_err = float(jnp.max(jnp.abs(out - ref)))
    assert jnp.allclose(out, ref, atol=3e-2, rtol=3e-2), max_err
    print("KERNEL_OK")
</pallas_src>

<mosaic_0001>
module attributes {stable_mosaic.version = 11 : i64} {
  func.func @_basic_block_kernel(%arg0: i32, %arg1: memref<1x8x256xf32, #tpu.memory_space<vmem>>, %arg2: memref<8x72xbf16, #tpu.memory_space<vmem>>, %arg3: memref<8x72xbf16, #tpu.memory_space<vmem>>, %arg4: memref<8x1xf32, #tpu.memory_space<vmem>>, %arg5: memref<8x1xf32, #tpu.memory_space<vmem>>, %arg6: memref<1x8x256xf32, #tpu.memory_space<vmem>>, %arg7: memref<8x320xf32, #tpu.memory_space<vmem>>) attributes {dimension_semantics = [#tpu.dimension_semantics<parallel>], iteration_bounds = array<i64: 2>, scalar_prefetch = 0 : i64, scratch_operands = 1 : i64, tpu.core_type = #tpu.core_type<tc>, window_params = [{transform_indices = @transform_0, window_bounds = array<i64: 1, 8, 256>}, {pipeline_mode = #tpu.pipeline_mode<synchronous>, transform_indices = @transform_1, window_bounds = array<i64: 8, 72>}, {pipeline_mode = #tpu.pipeline_mode<synchronous>, transform_indices = @transform_2, window_bounds = array<i64: 8, 72>}, {pipeline_mode = #tpu.pipeline_mode<synchronous>, transform_indices = @transform_3, window_bounds = array<i64: 8, 1>}, {pipeline_mode = #tpu.pipeline_mode<synchronous>, transform_indices = @transform_4, window_bounds = array<i64: 8, 1>}, {transform_indices = @transform_5, window_bounds = array<i64: 1, 8, 256>}]} {
    %0 = tpu.iota {dimensions = array<i32: 1>} : vector<1x256xi32>
    %c16_i32 = arith.constant 16 : i32
    %c0_i32 = arith.constant 0 : i32
    %1 = arith.cmpi eq, %c16_i32, %c0_i32 : i32
    %c1_i32 = arith.constant 1 : i32
    %2 = arith.select %1, %c1_i32, %c16_i32 : i32
    %3 = vector.broadcast %2 : i32 to vector<1x256xi32>
    %4 = arith.remsi %0, %3 : vector<1x256xi32>
    %c0_i32_0 = arith.constant 0 : i32
    %5 = vector.broadcast %c0_i32_0 : i32 to vector<1x256xi32>
    %6 = arith.cmpi ne, %4, %5 : vector<1x256xi32>
    %c0_i32_1 = arith.constant 0 : i32
    %7 = vector.broadcast %c0_i32_1 : i32 to vector<1x256xi32>
    %8 = arith.cmpi slt, %4, %7 : vector<1x256xi32>
    %c0_i32_2 = arith.constant 0 : i32
    %9 = arith.cmpi slt, %2, %c0_i32_2 : i32
    %10 = vector.broadcast %9 : i1 to vector<1x256xi1>
    %11 = vector.broadcast %10 : vector<1x256xi1> to vector<1x256xi1>
    %12 = arith.xori %8, %11 : vector<1x256xi1>
    %13 = arith.andi %12, %6 : vector<1x256xi1>
    %14 = vector.broadcast %2 : i32 to vector<1x256xi32>
    %15 = arith.addi %4, %14 : vector<1x256xi32>
    %16 = arith.select %13, %15, %4 : vector<1x256xi1>, vector<1x256xi32>
    %c0_i32_3 = arith.constant 0 : i32
    %17 = vector.broadcast %c0_i32_3 : i32 to vector<1x256xi32>
    %18 = arith.cmpi ne, %16, %17 : vector<1x256xi32>
    %c15_i32 = arith.constant 15 : i32
    %19 = vector.broadcast %c15_i32 : i32 to vector<1x256xi32>
    %20 = arith.cmpi ne, %16, %19 : vector<1x256xi32>
    %cst = arith.constant 0.000000e+00 : f32
    %21 = vector.broadcast %cst : f32 to vector<8x32xf32>
    %c0 = arith.constant 0 : index
    %c0_4 = arith.constant 0 : index
    %22 = vector.load %arg7[%c0, %c0_4] : memref<8x320xf32, #tpu.memory_space<vmem>>, vector<8x32xf32>
    tpu.vector_store %arg7[%c0, %c0_4], %21 {strides = array<i32>} : memref<8x320xf32, #tpu.memory_space<vmem>>, vector<8x32xf32>,
    %c0_5 = arith.constant 0 : index
    %c288 = arith.constant 288 : index
    %23 = vector.load %arg7[%c0_5, %c288] : memref<8x320xf32, #tpu.memory_space<vmem>>, vector<8x32xf32>
    tpu.vector_store %arg7[%c0_5, %c288], %21 {strides = array<i32>} : memref<8x320xf32, #tpu.memory_space<vmem>>, vector<8x32xf32>,
    %c0_6 = arith.constant 0 : index
    %c0_7 = arith.constant 0 : index
    %c0_8 = arith.constant 0 : index
    %24 = vector.load %arg1[%c0_6, %c0_7, %c0_8] : memref<1x8x256xf32, #tpu.memory_space<vmem>>, vector<1x8x256xf32>
    %25 = vector.shape_cast %24 : vector<1x8x256xf32> to vector<8x256xf32>
    %c0_9 = arith.constant 0 : index
    %c32 = arith.constant 32 : index
    %26 = vector.load %arg7[%c0_9, %c32] : memref<8x320xf32, #tpu.memory_space<vmem>>, vector<8x256xf32>
    tpu.vector_store %arg7[%c0_9, %c32], %25 {strides = array<i32>} : memref<8x320xf32, #tpu.memory_space<vmem>>, vector<8x256xf32>,
    %c0_10 = arith.constant 0 : index
    %c15 = arith.constant 15 : index
    %27 = vector.load %arg7[%c0_10, %c15] : memref<8x320xf32, #tpu.memory_space<vmem>>, vector<8x256xf32>
    %cst_11 = arith.constant 0.000000e+00 : f32
    %28 = vector.shape_cast %18 : vector<1x256xi1> to vector<1x256xi1>
    %29 = vector.broadcast %28 : vector<1x256xi1> to vector<8x256xi1>
    %30 = vector.broadcast %cst_11 : f32 to vector<8x256xf32>
    %31 = arith.select %29, %27, %30 : vector<8x256xi1>, vector<8x256xf32>
    %c0_12 = arith.constant 0 : index
    %c16 = arith.constant 16 : index
    %32 = vector.load %arg7[%c0_12, %c16] : memref<8x320xf32, #tpu.memory_space<vmem>>, vector<8x256xf32>
    %c0_13 = arith.constant 0 : index
    %c17 = arith.constant 17 : index
    %33 = vector.load %arg7[%c0_13, %c17] : memref<8x320xf32, #tpu.memory_space<vmem>>, vector<8x256xf32>
    %cst_14 = arith.constant 0.000000e+00 : f32
    %34 = vector.shape_cast %20 : vector<1x256xi1> to vector<1x256xi1>
    %35 = vector.broadcast %34 : vector<1x256xi1> to vector<8x256xi1>
    %36 = vector.broadcast %cst_14 : f32 to vector<8x256xf32>
    %37 = arith.select %35, %33, %36 : vector<8x256xi1>, vector<8x256xf32>
    %c0_15 = arith.constant 0 : index
    %c31 = arith.constant 31 : index
    %38 = vector.load %arg7[%c0_15, %c31] : memref<8x320xf32, #tpu.memory_space<vmem>>, vector<8x256xf32>
    %cst_16 = arith.constant 0.000000e+00 : f32
    %39 = vector.shape_cast %18 : vector<1x256xi1> to vector<1x256xi1>
    %40 = vector.broadcast %39 : vector<1x256xi1> to vector<8x256xi1>
    %41 = vector.broadcast %cst_16 : f32 to vector<8x256xf32>
    %42 = arith.select %40, %38, %41 : vector<8x256xi1>, vector<8x256xf32>
    %c0_17 = arith.constant 0 : index
    %c32_18 = arith.constant 32 : index
    %43 = vector.load %arg7[%c0_17, %c32_18] : memref<8x320xf32, #tpu.memory_space<vmem>>, vector<8x256xf32>
    %c0_19 = arith.constant 0 : index
    %c33 = arith.constant 33 : index
    %44 = vector.load %arg7[%c0_19, %c33] : memref<8x320xf32, #tpu.memory_space<vmem>>, vector<8x256xf32>
    %cst_20 = arith.constant 0.000000e+00 : f32
    %45 = vector.shape_cast %20 : vector<1x256xi1> to vector<1x256xi1>
    %46 = vector.broadcast %45 : vector<1x256xi1> to vector<8x256xi1>
    %47 = vector.broadcast %cst_20 : f32 to vector<8x256xf32>
    %48 = arith.select %46, %44, %47 : vector<8x256xi1>, vector<8x256xf32>
    %c0_21 = arith.constant 0 : index
    %c47 = arith.constant 47 : index
    %49 = vector.load %arg7[%c0_21, %c47] : memref<8x320xf32, #tpu.memory_space<vmem>>, vector<8x256xf32>
    %cst_22 = arith.constant 0.000000e+00 : f32
    %50 = vector.shape_cast %18 : vector<1x256xi1> to vector<1x256xi1>
    %51 = vector.broadcast %50 : vector<1x256xi1> to vector<8x256xi1>
    %52 = vector.broadcast %cst_22 : f32 to vector<8x256xf32>
    %53 = arith.select %51, %49, %52 : vector<8x256xi1>, vector<8x256xf32>
    %c0_23 = arith.constant 0 : index
    %c48 = arith.constant 48 : index
    %54 = vector.load %arg7[%c0_23, %c48] : memref<8x320xf32, #tpu.memory_space<vmem>>, vector<8x256xf32>
    %c0_24 = arith.constant 0 : index
    %c49 = arith.constant 49 : index
    %55 = vector.load %arg7[%c0_24, %c49] : memref<8x320xf32, #tpu.memory_space<vmem>>, vector<8x256xf32>
    %cst_25 = arith.constant 0.000000e+00 : f32
    %56 = vector.shape_cast %20 : vector<1x256xi1> to vector<1x256xi1>
    %57 = vector.broadcast %56 : vector<1x256xi1> to vector<8x256xi1>
    %58 = vector.broadcast %cst_25 : f32 to vector<8x256xf32>
    %59 = arith.select %57, %55, %58 : vector<8x256xi1>, vector<8x256xf32>
    %60 = tpu.concatenate %31, %32, %37, %42, %43, %48, %53, %54, %59 in 0 : vector<8x256xf32>, vector<8x256xf32>, vector<8x256xf32>, vector<8x256xf32>, vector<8x256xf32>, vector<8x256xf32>, vector<8x256xf32>, vector<8x256xf32>, vector<8x256xf32> -> vector<72x256xf32>
    %61 = arith.truncf %60 : vector<72x256xf32> to vector<72x256xbf16>
    %c0_26 = arith.constant 0 : index
    %c0_27 = arith.constant 0 : index
    %62 = vector.load %arg2[%c0_26, %c0_27] : memref<8x72xbf16, #tpu.memory_space<vmem>>, vector<8x72xbf16>
    %cst_28 = arith.constant dense<0.000000e+00> : vector<8x256xf32>
    %63 = tpu.matmul %62, %61, %cst_28 {dimension_numbers = #tpu.dot_dimension_numbers<[1], [0], [0], [1], [0, 0, 1, 1], [], []>} : vector<8x72xbf16>, vector<72x256xbf16>, vector<8x256xf32> -> vector<8x256xf32>
    %c0_29 = arith.constant 0 : index
    %c0_30 = arith.constant 0 : index
    %64 = vector.load %arg4[%c0_29, %c0_30] : memref<8x1xf32, #tpu.memory_space<vmem>>, vector<8x1xf32>
    %65 = vector.broadcast %64 : vector<8x1xf32> to vector<8x256xf32>
    %66 = arith.addf %63, %65 : vector<8x256xf32>
    %cst_31 = arith.constant 0.000000e+00 : f32
    %67 = vector.broadcast %cst_31 : f32 to vector<8x256xf32>
    %68 = arith.maximumf %66, %67 : vector<8x256xf32>
    %c0_32 = arith.constant 0 : index
    %c32_33 = arith.constant 32 : index
    %69 = vector.load %arg7[%c0_32, %c32_33] : memref<8x320xf32, #tpu.memory_space<vmem>>, vector<8x256xf32>
    tpu.vector_store %arg7[%c0_32, %c32_33], %68 {strides = array<i32>} : memref<8x320xf32, #tpu.memory_space<vmem>>, vector<8x256xf32>,
    %c0_34 = arith.constant 0 : index
    %c15_35 = arith.constant 15 : index
    %70 = vector.load %arg7[%c0_34, %c15_35] : memref<8x320xf32, #tpu.memory_space<vmem>>, vector<8x256xf32>
    %cst_36 = arith.constant 0.000000e+00 : f32
    %71 = vector.shape_cast %18 : vector<1x256xi1> to vector<1x256xi1>
    %72 = vector.broadcast %71 : vector<1x256xi1> to vector<8x256xi1>
    %73 = vector.broadcast %cst_36 : f32 to vector<8x256xf32>
    %74 = arith.select %72, %70, %73 : vector<8x256xi1>, vector<8x256xf32>
    %c0_37 = arith.constant 0 : index
    %c16_38 = arith.constant 16 : index
    %75 = vector.load %arg7[%c0_37, %c16_38] : memref<8x320xf32, #tpu.memory_space<vmem>>, vector<8x256xf32>
    %c0_39 = arith.constant 0 : index
    %c17_40 = arith.constant 17 : index
    %76 = vector.load %arg7[%c0_39, %c17_40] : memref<8x320xf32, #tpu.memory_space<vmem>>, vector<8x256xf32>
    %cst_41 = arith.constant 0.000000e+00 : f32
    %77 = vector.shape_cast %20 : vector<1x256xi1> to vector<1x256xi1>
    %78 = vector.broadcast %77 : vector<1x256xi1> to vector<8x256xi1>
    %79 = vector.broadcast %cst_41 : f32 to vector<8x256xf32>
    %80 = arith.select %78, %76, %79 : vector<8x256xi1>, vector<8x256xf32>
    %c0_42 = arith.constant 0 : index
    %c31_43 = arith.constant 31 : index
    %81 = vector.load %arg7[%c0_42, %c31_43] : memref<8x320xf32, #tpu.memory_space<vmem>>, vector<8x256xf32>
    %cst_44 = arith.constant 0.000000e+00 : f32
    %82 = vector.shape_cast %18 : vector<1x256xi1> to vector<1x256xi1>
    %83 = vector.broadcast %82 : vector<1x256xi1> to vector<8x256xi1>
    %84 = vector.broadcast %cst_44 : f32 to vector<8x256xf32>
    %85 = arith.select %83, %81, %84 : vector<8x256xi1>, vector<8x256xf32>
    %c0_45 = arith.constant 0 : index
    %c32_46 = arith.constant 32 : index
    %86 = vector.load %arg7[%c0_45, %c32_46] : memref<8x320xf32, #tpu.memory_space<vmem>>, vector<8x256xf32>
    %c0_47 = arith.constant 0 : index
    %c33_48 = arith.constant 33 : index
    %87 = vector.load %arg7[%c0_47, %c33_48] : memref<8x320xf32, #tpu.memory_space<vmem>>, vector<8x256xf32>
    %cst_49 = arith.constant 0.000000e+00 : f32
    %88 = vector.shape_cast %20 : vector<1x256xi1> to vector<1x256xi1>
    %89 = vector.broadcast %88 : vector<1x256xi1> to vector<8x256xi1>
    %90 = vector.broadcast %cst_49 : f32 to vector<8x256xf32>
    %91 = arith.select %89, %87, %90 : vector<8x256xi1>, vector<8x256xf32>
    %c0_50 = arith.constant 0 : index
    %c47_51 = arith.constant 47 : index
    %92 = vector.load %arg7[%c0_50, %c47_51] : memref<8x320xf32, #tpu.memory_space<vmem>>, vector<8x256xf32>
    %cst_52 = arith.constant 0.000000e+00 : f32
    %93 = vector.shape_cast %18 : vector<1x256xi1> to vector<1x256xi1>
    %94 = vector.broadcast %93 : vector<1x256xi1> to vector<8x256xi1>
    %95 = vector.broadcast %cst_52 : f32 to vector<8x256xf32>
    %96 = arith.select %94, %92, %95 : vector<8x256xi1>, vector<8x256xf32>
    %c0_53 = arith.constant 0 : index
    %c48_54 = arith.constant 48 : index
    %97 = vector.load %arg7[%c0_53, %c48_54] : memref<8x320xf32, #tpu.memory_space<vmem>>, vector<8x256xf32>
    %c0_55 = arith.constant 0 : index
    %c49_56 = arith.constant 49 : index
    %98 = vector.load %arg7[%c0_55, %c49_56] : memref<8x320xf32, #tpu.memory_space<vmem>>, vector<8x256xf32>
    %cst_57 = arith.constant 0.000000e+00 : f32
    %99 = vector.shape_cast %20 : vector<1x256xi1> to vector<1x256xi1>
    %100 = vector.broadcast %99 : vector<1x256xi1> to vector<8x256xi1>
    %101 = vector.broadcast %cst_57 : f32 to vector<8x256xf32>
    %102 = arith.select %100, %98, %101 : vector<8x256xi1>, vector<8x256xf32>
    %103 = tpu.concatenate %74, %75, %80, %85, %86, %91, %96, %97, %102 in 0 : vector<8x256xf32>, vector<8x256xf32>, vector<8x256xf32>, vector<8x256xf32>, vector<8x256xf32>, vector<8x256xf32>, vector<8x256xf32>, vector<8x256xf32>, vector<8x256xf32> -> vector<72x256xf32>
    %104 = arith.truncf %103 : vector<72x256xf32> to vector<72x256xbf16>
    %c0_58 = arith.constant 0 : index
    %c0_59 = arith.constant 0 : index
    %105 = vector.load %arg3[%c0_58, %c0_59] : memref<8x72xbf16, #tpu.memory_space<vmem>>, vector<8x72xbf16>
    %cst_60 = arith.constant dense<0.000000e+00> : vector<8x256xf32>
    %106 = tpu.matmul %105, %104, %cst_60 {dimension_numbers = #tpu.dot_dimension_numbers<[1], [0], [0], [1], [0, 0, 1, 1], [], []>} : vector<8x72xbf16>, vector<72x256xbf16>, vector<8x256xf32> -> vector<8x256xf32>
    %c0_61 = arith.constant 0 : index
    %c0_62 = arith.constant 0 : index
    %107 = vector.load %arg5[%c0_61, %c0_62] : memref<8x1xf32, #tpu.memory_space<vmem>>, vector<8x1xf32>
    %108 = vector.broadcast %107 : vector<8x1xf32> to vector<8x256xf32>
    %109 = arith.addf %106, %108 : vector<8x256xf32>
    %110 = arith.addf %109, %25 : vector<8x256xf32>
    %cst_63 = arith.constant 0.000000e+00 : f32
    %111 = vector.broadcast %cst_63 : f32 to vector<8x256xf32>
    %112 = arith.maximumf %110, %111 : vector<8x256xf32>
    %c0_64 = arith.constant 0 : index
    %c0_65 = arith.constant 0 : index
    %c0_66 = arith.constant 0 : index
    %113 = vector.load %arg6[%c0_64, %c0_65, %c0_66] : memref<1x8x256xf32, #tpu.memory_space<vmem>>, vector<1x8x256xf32>
    %114 = vector.shape_cast %113 : vector<1x8x256xf32> to vector<8x256xf32>
    %115 = vector.shape_cast %112 : vector<8x256xf32> to vector<1x8x256xf32>
    tpu.vector_store %arg6[%c0_64, %c0_65, %c0_66], %115 {strides = array<i32>} : memref<1x8x256xf32, #tpu.memory_space<vmem>>, vector<1x8x256xf32>,
    return
  }
  func.func @transform_0(%arg0: i32) -> (i32, i32, i32) {
    %c0_i32 = arith.constant 0 : i32
    %c0_i32_0 = arith.constant 0 : i32
    %c0_i32_1 = arith.constant 0 : i32
    return %arg0, %c0_i32, %c0_i32_0 : i32, i32, i32
  }
  func.func @transform_1(%arg0: i32) -> (i32, i32) {
    %c0_i32 = arith.constant 0 : i32
    %c0_i32_0 = arith.constant 0 : i32
    %c0_i32_1 = arith.constant 0 : i32
    return %c0_i32, %c0_i32_0 : i32, i32
  }
  func.func @transform_2(%arg0: i32) -> (i32, i32) {
    %c0_i32 = arith.constant 0 : i32
    %c0_i32_0 = arith.constant 0 : i32
    %c0_i32_1 = arith.constant 0 : i32
    return %c0_i32, %c0_i32_0 : i32, i32
  }
  func.func @transform_3(%arg0: i32) -> (i32, i32) {
    %c0_i32 = arith.constant 0 : i32
    %c0_i32_0 = arith.constant 0 : i32
    %c0_i32_1 = arith.constant 0 : i32
    return %c0_i32, %c0_i32_0 : i32, i32
  }
  func.func @transform_4(%arg0: i32) -> (i32, i32) {
    %c0_i32 = arith.constant 0 : i32
    %c0_i32_0 = arith.constant 0 : i32
    %c0_i32_1 = arith.constant 0 : i32
    return %c0_i32, %c0_i32_0 : i32, i32
  }
  func.func @transform_5(%arg0: i32) -> (i32, i32, i32) {
    %c0_i32 = arith.constant 0 : i32
    %c0_i32_0 = arith.constant 0 : i32
    %c0_i32_1 = arith.constant 0 : i32
    return %arg0, %c0_i32, %c0_i32_0 : i32, i32, i32
  }
}

</mosaic_0001>

<bundles_post_ra>
// kernel: tpu_custom_call.1
= control target key start
LH: loop header
LB: loop body
LE: loop exit
PB: predicated region body
PF: predicated region fallthrough
CT: control target
= control target key end

     0   :  { %10 = vsyncpa [#allocation4], 0  ;;  %s1460_s0 = inlined_call_operand.hbm [shape: f32[2,8,256], index: 0, kind: input, shape index: {}]   ;;  %s1461_s1 = inlined_call_operand.vmem [shape: bf16[8,72], index: 1, kind: input, shape index: {}]   ;;  %s1462_s2 = inlined_call_operand.vmem [shape: bf16[8,72], index: 2, kind: input, shape index: {}]   ;;  %s1463_s3 = inlined_call_operand.vmem [shape: f32[8,1], index: 3, kind: input, shape index: {}]   ;;  %s1464_s4 = inlined_call_operand.vmem [shape: f32[8,1], index: 4, kind: input, shape index: {}]   ;;  %s1465_s5 = inlined_call_operand.hbm [shape: f32[2,8,256], index: 5, kind: output, shape index: {}]  }
   0x1   :  { %12 = vsyncpa [#allocation4 + $0x1], 0 }
   0x2   :  { %13 = vsyncpa [#allocation5], 0 }
   0x3   :  { %15 = vsyncpa [#allocation5 + $0x1], 0  ;;  %s1102_s18 = smov 0   ;;  %s1104_s19 = smov 0  }
   0x4   :  { %s1106_s20 = smov 0   ;;  %s1108_s21 = smov 0  }
   0x5 LB: > { %s1123_s22 = sadd.s32 4294967295, %s1057_s21   ;;  %s742_s23 = sadd.s32 4294967294, %s1057_s21   ;;  %s1057_s21 = sphi %s1108_s21, %s1521_s21   ;;  %s1053_s20 = sphi %s1106_s20, %s1520_s20   ;;  %s1049_s19 = sphi %s1104_s19, %s1519_s19   ;;  %s1045_s18 = sphi %s1102_s18, %s1518_s18  }
   0x6   : > { %s1127_s24 = sadd.s32 1, %s1057_s21   ;;  %s28_s25 = sadd.s32 1, %s1053_s20 }
   0x7   : > { %s25_s26 = ssub.s32 %s1057_s21, %s1127_s24  ;;  %p35_p0 = scmp.ne.s32.totalorder %s1053_s20, %s1049_s19 }
   0x8   : > { %p26_p1 = scmp.eq.s32.totalorder %s25_s26, 0  ;;  %p36_p2 = scmp.eq.s32.totalorder %s1057_s21, 0 }
   0x9   : > { %p41_p3 = scmp.ne.s32.totalorder %s1049_s19, %s1045_s18  ;;  %p42_p4 = scmp.eq.s32.totalorder %s1123_s22, 0 }
   0xa   : > { %s1139_s27 = scalar_select %p26_p1, %s1053_s20, %s28_s25  }
   0xb   : > { %p1141_p5 = por %p36_p2, %p35_p0  ;;  %p1145_p6 = por %p42_p4, %p41_p3 }
   0xc   : > { %p149_p7 = scmp.eq.s32.totalorder %s1123_s22, 1  ;;  %p155_p8 = scmp.eq.s32.totalorder %s742_s23, 1 }
   0xd   : > { %p822_p10 = scmp.lt.s32.totalorder %s1057_s21, 2  ;;  %s187_s7 = sand.u32 1, %s1053_s20  }
   0xe   : > { %p1152_p11 = por %p149_p7, %p35_p0  ;;  %p1156_p12 = por %p155_p8, %p41_p3 }
   0xf   : > { %s808_s8 = sshll.u32 %s1057_s21, 4  ;;  %s745_s9 = sshll.u32 %s187_s7, 4 }
  0x10   : > { %s196_s12 = scalar_lea.hbm %s1460_s0, %s808_s8  ;;  %s191_s14 = scalar_lea.vmem [#allocation3], %s745_s9 }
  0x11   : > { %s198_s13 = sshll.u32 %s196_s12, 4  ;;  %s200_s15 = sshll.u32 %s191_s14, 4  ;;  %s199_s13 = int_to_ptr.hbm [resolvable:$true] %s198_s13  ;;  %s201_s15 = int_to_ptr.vmem [resolvable:$true] %s200_s15 }
  0x12   : > { %p1167_p13 = pnand %p822_p10, %p1141_p5  ;;  %p748_p0 = scmp.ge.s32.totalorder %s1057_s21, 1 }
  0x13   : > { %p205_p1 = scmp.lt.s32.totalorder %s1057_s21, 3  ;;  %s188_s17 = scalar_lea.sflag [#allocation4], %s187_s7 }
  0x14   : > { %s961_s23 = sshra.s32 %s199_s13, 4  ;;  %p965_p3 = pneg %p1167_p13  ;;  %s962_s23 = int_to_ptr.hbm [resolvable:$true] %s961_s23 }
  0x15   : > { %s963_s25 = scalar_lea.hbm %s962_s23, 16  ;;  %s968_s28 = scalar_lea.hbm %s1460_s0, 32 }
  0x16   : > { %p964_p2 = scmp.ne.s32.totalorder %s962_s23, %s963_s25  ;;  %p969_p5 = scmp.lt.s32.totalorder %s962_s23, %s1460_s0 }
  0x17   : > { %p970_p8 = scmp.lt.s32.totalorder %s968_s28, %s963_s25 }
  0x18   : > { %p966_p4 = pnand %p965_p3, %p964_p2 }
  0x19   : > { %p971_p10 = por %p970_p8, %p969_p5 }
  0x1a   : > { %p967_p7 = pneg %p966_p4 }
  0x1c   : > { %p972_p9 = pnand %p971_p10, %p967_p7 }
  0x1e   : > { %975 = shalt.err (!%p972_p9)
}
  0x1f   : > { %817 = dma.hbm_to_vmem [thread:$0]  (!%p1167_p13), %s199_s13, 256, %s201_s15, %s188_s17  }
  0x20   : > { %p206_p2 = pnand %p748_p0, %p205_p1 }
  0x21   : > { %s1188_s7 = sand.u32 (!%p206_p2), 1, %s1049_s19  }
  0x22   : > { %209 = sbr.rel (%p206_p2) target bundleno = 901 (0x385), region = 40  ;;  %s749_s11 = sshll.u32 (!%p206_p2), %s1188_s7, 4 }
  0x23   : > { %s212_s12 = scalar_lea.sflag (!%p206_p2), [#allocation4], %s1188_s7  ;;  %s215_s14 = scalar_lea.vmem (!%p206_p2), [#allocation3], %s749_s11 }
  0x27   : > { %1036 = dma.done.wait (%p1145_p6), %s212_s12, 256  }
  0x28   : > { %1038 = vsyncadd (%p1145_p6), %s212_s12, 4294967040  ;;  %vm275_vm0 = vcmask 261120   ;;  %v1059_v0 = vmov 0.0   ;;  %v1199_v1 = vld [vmem:[%s215_s14] sm:$0xff]  ;;  %s1060_s13 = smov 32   ;;  %v1203_v2 = vld [vmem:[%s215_s14 + $0x8] sm:$0xff]  ;;  %v244_v15 = vlaneseq }
  0x29   : > { %276 = vst.msk [vmem:[#allocation2] sm:$0xff] %vm275_vm0, %v1059_v0  ;;  %283 = vrot.lane.b32.xlu0 %v1199_v1, %s1060_s13  ;;  %vm277_vm1 = vcmask 523520   ;;  %vm291_vm2 = vcmask 1047808   ;;  %s1061_s29 = smov 95   ;;  %s1062_s15 = smov 81   ;;  %v431_v24 = vld [vmem:[%s1463_s3] sm:$0xff] }
  0x2a   : > { %278 = vst.msk [vmem:[#allocation2 + $0x10] sm:$0xff] %vm277_vm1, %v1059_v0  ;;  %s1063_s16 = smov 79   ;;  %s1064_s17 = smov 97   ;;  %v245_v17 = vand.u32 127, %v244_v15  ;;  %vm380_vm3 = vcmask 646144   ;;  %v1070_v26 = vmov 0  }
  0x2b   : > { %s1065_s23 = smov 96   ;;  %s1066_s25 = smov 80   ;;  %914 = vset.pattern.permute.xlu2 %v1070_v26  ;;  %960 = vset.pattern.permute.xlu0 %v1070_v26  ;;  %vm1468_vm6 = vcmask 662528   ;;  %vm1466_vm7 = vcmask 654336   ;;  %vm1471_vm8 = vcmask 1043456   ;;  %vm1071_vm11 = vmmov 1  }
  0x2c   : > { %s1067_s26 = smov 111   ;;  %s1068_s8 = smov 112   ;;  %v246_v19 = vadd.s32 128, %v245_v17  ;;  %v251_v21 = vand.u32 15, %v245_v17  ;;  %vm1467_vm13 = vcmask 785408   ;;  %vm1469_vm15 = vcmask 777216  }
  0x2d   : > { %s1069_s28 = smov 113  }
  0x2e   : > { %v258_v22 = vand.u32 15, %v246_v19  ;;  %vm1239_vm4 = vcmp.ne.s32.totalorder %v251_v21, 15  ;;  %vm1253_vm9 = vcmp.ne.s32.totalorder %v251_v21, 0 }
  0x2f   : > { %vm1269_vm12 = vmpackc.low %vm1071_vm11, %vm1253_vm9 }
  0x30   : > { %vm1243_vm5 = vcmp.ne.s32.totalorder %v258_v22, 15  ;;  %vm1257_vm10 = vcmp.ne.s32.totalorder %v258_v22, 0  ;;  %vm1291_vm1 = vmpackc.low %vm1239_vm4, %vm1071_vm11 }
  0x31   : > { %285 = vrot.lane.b32.xlu0 %v1203_v2, %s1060_s13  ;;  %vm1277_vm14 = vmpackc.low %vm1071_vm11, %vm1257_vm10 }
  0x9b   : > { %v284_v3 = vpop.permute.xlu0 %283 }
  0x9c   : > { %292 = vst.msk [vmem:[#allocation2] sm:$0xff] %vm291_vm2, %v284_v3 }
  0xa3   : > { %v286_v4 = vpop.permute.xlu0 %285  ;;  %v295_v7 = vld [vmem:[#allocation2] sm:$0xff] }
  0xa4   : > { %294 = vst.msk [vmem:[#allocation2 + $0x10] sm:$0xff] %vm275_vm0, %v286_v4  ;;  %v287_v6 = vsel %vm275_vm0, %v284_v3, %v286_v4 }
  0xa5   : > { %v879_v8 = vpack.i.bf16 %v287_v6, %v295_v7 }
  0xab   : > { %v297_v5 = vld [vmem:[#allocation2 + $0x10] sm:$0xff] }
  0xac   : > { %352 = vrot.lane.b32.xlu0 %v297_v5, %s1061_s29  ;;  %365 = vrot.lane.b32.xlu2 %v297_v5, %s1062_s15 }
  0xad   : > { %378 = vrot.lane.b32.xlu1 %v297_v5, %s1063_s16 }
  0xb4   : > { %339 = vrot.lane.b32.xlu0 %v297_v5, %s1064_s17  ;;  %402 = vrot.lane.b32.xlu2 %v297_v5, %s1065_s23 }
  0xb5   : > { %413 = vrot.lane.b32.xlu1 %v297_v5, %s1066_s25 }
  0xbc   : > { %880 = vrot.lane.b32.xlu0 %v879_v8, %s1066_s25  ;;  %875 = vrot.lane.b32.xlu2 %v879_v8, %s1062_s15 }
  0xbd   : > { %326 = vrot.lane.b32.xlu1 %v297_v5, %s1067_s26 }
  0xc4   : > { %895 = vrot.lane.b32.xlu0 %v879_v8, %s1067_s26  ;;  %885 = vrot.lane.b32.xlu2 %v879_v8, %s1061_s29 }
  0xc5   : > { %870 = vrot.lane.b32.xlu1 %v879_v8, %s1063_s16 }
  0xcc   : > { %910 = vrot.lane.b32.xlu0 %v879_v8, %s1068_s8  ;;  %900 = vrot.lane.b32.xlu2 %v879_v8, %s1064_s17 }
  0xcd   : > { %890 = vrot.lane.b32.xlu1 %v879_v8, %s1065_s23 }
  0xd4   : > { %309 = vrot.lane.b32.xlu2 %v297_v5, %s1069_s28 }
  0xd5   : > { %905 = vrot.lane.b32.xlu1 %v879_v8, %s1069_s28 }
  0xdc   : > { %434 = vperm.xlu2 %914, %v431_v24  }
  0xdd   : > { %391 = vrot.lane.b32.xlu1 %v297_v5, %s1068_s8 }
 0x106   : > { %v366_v9 = vpop.permute.xlu2 %365 }
 0x10e   : > { %v1230_v12 = vpop.permute.xlu2 %402 }
 0x116   : > { %v876_v16 = vpop.permute.xlu2 %875 }
 0x117   : > { %v878_v31 = vunpack.i.h.bf16 %v876_v16  ;;  %v877_v36 = vunpack.i.l.bf16 %v876_v16 }
 0x119   : > { %v368_v49 = vsel %vm1468_vm6, %v877_v36, %v878_v31  ;;  %v369_v51 = vsel %vm1468_vm6, %v878_v31, %v366_v9  ;;  %vm1472_vm6 = vcmask 793600  }
 0x11e   : > { %v1228_v10 = vpop.permute.xlu0 %352  ;;  %v886_v23 = vpop.permute.xlu2 %885 }
 0x11f   : > { %v379_v11 = vpop.permute.xlu1 %378  ;;  %v888_v52 = vunpack.i.h.bf16 %v886_v23  ;;  %v887_v53 = vunpack.i.l.bf16 %v886_v23 }
 0x121   : > { %v355_v5 = vsel %vm1469_vm15, %v887_v53, %v888_v52  ;;  %v356_v6 = vsel %vm1469_vm15, %v888_v52, %v1228_v10  ;;  %vm1475_vm15 = vcmask 924672  }
 0x126   : > { %v1232_v13 = vpop.permute.xlu0 %339  ;;  %v901_v54 = vpop.permute.xlu2 %900 }
 0x127   : > { %v414_v14 = vpop.permute.xlu1 %413  ;;  %v903_v0 = vunpack.i.h.bf16 %v901_v54  ;;  %v902_v3 = vunpack.i.l.bf16 %v901_v54 }
 0x129   : > { %v342_v10 = vsel %vm1472_vm6, %v902_v3, %v903_v0  ;;  %v343_v16 = vsel %vm1472_vm6, %v903_v0, %v1232_v13  ;;  %vm1473_vm6 = vcmask 588800  }
 0x12e   : > { %v881_v20 = vpop.permute.xlu0 %880 }
 0x12f   : > { %v1234_v18 = vpop.permute.xlu1 %326  ;;  %v883_v32 = vunpack.i.h.bf16 %v881_v20  ;;  %v882_v33 = vunpack.i.l.bf16 %v881_v20 }
 0x131   : > { %v416_v46 = vsel %vm1466_vm7, %v882_v33, %v883_v32  ;;  %v417_v47 = vsel %vm1466_vm7, %v883_v32, %v414_v14  ;;  %vm1470_vm7 = vcmask 908288  }
 0x132   : > { %v752_v58 = vpack.c.bf16 %v416_v46, %v368_v49  ;;  %v765_v59 = vpack.c.bf16 %v417_v47, %v369_v51  ;;  %v608_v51 = vld [vmem:[%s1464_s4] sm:$0xff] }
 0x136   : > { %v896_v37 = vpop.permute.xlu0 %895 }
 0x137   : > { %v871_v25 = vpop.permute.xlu1 %870  ;;  %v898_v60 = vunpack.i.h.bf16 %v896_v37  ;;  %v897_v61 = vunpack.i.l.bf16 %v896_v37 }
 0x138   : > { %v873_v27 = vunpack.i.h.bf16 %v871_v25  ;;  %v872_v28 = vunpack.i.l.bf16 %v871_v25  ;;  %v310_v25 = vpop.permute.xlu2 %309 }
 0x139   : > { %v330_v14 = vsel %vm1470_vm7, %v898_v60, %v1234_v18 }
 0x13a   : > { %v381_v34 = vsel %vm380_vm3, %v872_v28, %v873_v27  ;;  %v382_v35 = vsel %vm380_vm3, %v873_v27, %v379_v11  ;;  %v771_v22 = vpack.c.bf16 %v343_v16, %v330_v14  ;;  %v430_v27 = vld [vmem:[%s1461_s1] sm:$0xf] }
 0x13b   : > { %v385_v38 = vsel %vm1239_vm4, %v381_v34, 0.0  ;;  %v386_v39 = vsel %vm1243_vm5, %v382_v35, 0.0 }
 0x13c   : > { %v428_v40 = vpack.c.bf16 %v385_v38, %v385_v38  ;;  %v429_v41 = vpack.c.bf16 %v386_v39, %v386_v39 }
 0x13e   : > { %v443_v44 = vsel %vm1471_vm8, %v428_v40, 0  ;;  %v446_v45 = vsel %vm1471_vm8, %v429_v41, 0  ;;  %v911_v8 = vpop.permute.xlu0 %910  ;;  %vm1474_vm8 = vcmask 916480  }
 0x13f   : > { %v891_v48 = vpop.permute.xlu1 %890  ;;  %451 = vmatpush.bf16.msra.mxu0 %v443_v44  ;;  %464 = vmatpush.bf16.msra.mxu1 %v446_v45  ;;  %v913_v17 = vunpack.i.h.bf16 %v911_v8  ;;  %v912_v18 = vunpack.i.l.bf16 %v911_v8 }
 0x140   : > { %v893_v55 = vunpack.i.h.bf16 %v891_v48  ;;  %v892_v56 = vunpack.i.l.bf16 %v891_v48  ;;  %v435_v33 = vpop.permute.xlu2 %434 }
 0x141   : > { %v394_v13 = vsel %vm1474_vm8, %v912_v18, %v913_v17 }
 0x142   : > { %v405_v62 = vsel %vm1467_vm13, %v892_v56, %v893_v55  ;;  %v406_v63 = vsel %vm1467_vm13, %v893_v55, %v1230_v12  ;;  %vm1301_vm13 = vmpackc.low %vm1243_vm5, %vm1071_vm11  ;;  %v329_v12 = vsel %vm1470_vm7, %v897_v61, %v898_v60 }
 0x143   : > { %753 = vmatpush.bf16.msk.msra.mxu0 %vm1269_vm12, %v752_v58  ;;  %766 = vmatpush.bf16.msk.msra.mxu1 %vm1277_vm14, %v765_v59  ;;  %v755_v9 = vpack.c.bf16 %v355_v5, %v405_v62  ;;  %v768_v11 = vpack.c.bf16 %v356_v6, %v406_v63  ;;  %vm757_vm11 = vmpackc.low %vm1253_vm9, %vm1239_vm4  ;;  %v758_v21 = vpack.c.bf16 %v342_v10, %v329_v12 }
 0x144   : > { %vm770_vm7 = vmpackc.low %vm1257_vm10, %vm1243_vm5 }
 0x147   : > { %v906_v15 = vpop.permute.xlu1 %905  ;;  %756 = vmatpush.bf16.msk.msra.mxu0 %vm1291_vm1, %v755_v9  ;;  %769 = vmatpush.bf16.msk.msra.mxu1 %vm1301_vm13, %v768_v11 }
 0x148   : > { %v908_v19 = vunpack.i.h.bf16 %v906_v15  ;;  %v907_v20 = vunpack.i.l.bf16 %v906_v15 }
 0x14a   : > { %v312_v23 = vsel %vm1475_vm15, %v907_v20, %v908_v19  ;;  %v313_v28 = vsel %vm1475_vm15, %v908_v19, %v310_v25 }
 0x14b   : > { %759 = vmatpush.bf16.msk.msra.mxu0 %vm757_vm11, %v758_v21  ;;  %772 = vmatpush.bf16.msk.msra.mxu1 %vm770_vm7, %v771_v22  ;;  %v761_v24 = vpack.c.bf16 %v394_v13, %v312_v23 }
 0x14f   : > { %v392_v26 = vpop.permute.xlu1 %391  ;;  %762 = vmatpush.bf16.msk.msra.mxu0 %vm1269_vm12, %v761_v24 }
 0x150   : > { %v395_v31 = vsel %vm1474_vm8, %v913_v17, %v392_v26  ;;  %vm1503_vm8 = vcmask 785408  }
 0x151   : > { %v774_v32 = vpack.c.bf16 %v395_v31, %v313_v28  ;;  %vm1504_vm15 = vmmov %vm1503_vm8 }
 0x152   : > { %763 = vmatmul.msk.bf16.vlgmr.msra.gmra.mxu0 %vm1473_vm6, %v430_v27 }
 0x153   : > { %775 = vmatpush.bf16.msk.msra.mxu1 %vm1277_vm14, %v774_v32 }
 0x156   : > { %776 = vmatmul.msk.bf16.vlgmr.msra.gmra.mxu1 %vm1473_vm6, %v430_v27 }
 0x1cf   : > { %v457_v34 = vpop.f32.mrf.mxu0 }
 0x1d0   : > { %v458_v35 = vadd.f32 %v457_v34, %v435_v33 }
 0x1d2   : > { %v474_v36 = vmax.f32 %v458_v35, 0.0 }
 0x1d3   : > { %v470_v37 = vpop.f32.mrf.mxu1 }
 0x1d4   : > { %v471_v38 = vadd.f32 %v470_v37, %v435_v33  ;;  %478 = vrot.lane.b32.xlu0 %v474_v36, %s1060_s13 }
 0x1d6   : > { %v475_v39 = vmax.f32 %v471_v38, 0.0 }
 0x1d7   : > { %v459_v40 = vpop.f32.mrf.mxu0 }
 0x1d8   : > { %480 = vrot.lane.b32.xlu1 %v475_v39, %s1060_s13  ;;  %s1011_s13 = scalar_lea.hbm %s1465_s5, 32 }
 0x1db   : > { %v472_v41 = vpop.f32.mrf.mxu1 }
 0x246   : > { %v479_v44 = vpop.permute.xlu0 %478 }
 0x247   : > { %486 = vst.msk [vmem:[#allocation2] sm:$0xff] %vm291_vm2, %v479_v44 }
 0x24a   : > { %v481_v45 = vpop.permute.xlu1 %480 }
 0x24b   : > { %488 = vst.msk [vmem:[#allocation2 + $0x10] sm:$0xff] %vm275_vm0, %v481_v45  ;;  %v482_v46 = vsel %vm275_vm0, %v479_v44, %v481_v45  ;;  %vm1497_vm0 = vcmask 1043456  }
 0x24c   : > { %vm1498_vm2 = vmmov %vm1497_vm0 }
 0x24e   : > { %v489_v48 = vld [vmem:[#allocation2] sm:$0xff] }
 0x24f   : > { %v920_v49 = vpack.i.bf16 %v482_v46, %v489_v48 }
 0x252   : > { %v491_v47 = vld [vmem:[#allocation2 + $0x10] sm:$0xff] }
 0x253   : > { %591 = vrot.lane.b32.xlu1 %v491_v47, %s1066_s25  ;;  %547 = vrot.lane.b32.xlu2 %v491_v47, %s1062_s15 }
 0x254   : > { %559 = vrot.lane.b32.xlu0 %v491_v47, %s1063_s16 }
 0x25b   : > { %511 = vrot.lane.b32.xlu1 %v491_v47, %s1067_s26  ;;  %581 = vrot.lane.b32.xlu2 %v491_v47, %s1065_s23 }
 0x25c   : > { %535 = vrot.lane.b32.xlu0 %v491_v47, %s1061_s29 }
 0x263   : > { %921 = vrot.lane.b32.xlu1 %v920_v49, %s1062_s15  ;;  %916 = vrot.lane.b32.xlu2 %v920_v49, %s1063_s16 }
 0x264   : > { %523 = vrot.lane.b32.xlu0 %v491_v47, %s1064_s17 }
 0x26b   : > { %936 = vrot.lane.b32.xlu1 %v920_v49, %s1065_s23  ;;  %931 = vrot.lane.b32.xlu2 %v920_v49, %s1061_s29 }
 0x26c   : > { %926 = vrot.lane.b32.xlu0 %v920_v49, %s1066_s25 }
 0x273   : > { %951 = vrot.lane.b32.xlu1 %v920_v49, %s1069_s28  ;;  %946 = vrot.lane.b32.xlu2 %v920_v49, %s1064_s17  ;;  %s809_s17 = sshll.u32 %s1123_s22, 4  ;;  %s656_s22 = scalar_lea.sflag [#allocation5], %s1188_s7 }
 0x274   : > { %941 = vrot.lane.b32.xlu0 %v920_v49, %s1067_s26  ;;  %s667_s26 = scalar_lea.hbm %s1465_s5, %s809_s17 }
 0x275   : > { %s671_s9 = sshll.u32 %s667_s26, 4  ;;  %s672_s9 = int_to_ptr.hbm [resolvable:$true] %s671_s9 }
 0x276   : > { %s1005_s10 = sshra.s32 %s672_s9, 4  ;;  %s1006_s10 = int_to_ptr.hbm [resolvable:$true] %s1005_s10 }
 0x277   : > { %s1007_s12 = scalar_lea.hbm %s1006_s10, 16  ;;  %p1012_p0 = scmp.lt.s32.totalorder %s1006_s10, %s1465_s5 }
 0x278   : > { %p1008_p6 = scmp.ne.s32.totalorder %s1006_s10, %s1007_s12  ;;  %p1013_p1 = scmp.lt.s32.totalorder %s1011_s13, %s1007_s12 }
 0x27a   : > { %p1009_p9 = pnand %p1008_p6, %p1152_p11  ;;  %p1014_p3 = por %p1013_p1, %p1012_p0 }
 0x27b   : > { %571 = vrot.lane.b32.xlu1 %v491_v47, %s1068_s8  ;;  %499 = vrot.lane.b32.xlu2 %v491_v47, %s1069_s28 }
 0x27c   : > { %956 = vrot.lane.b32.xlu0 %v920_v49, %s1068_s8  ;;  %s242_s8 = scalar_lea.vmem [#allocation6], %s749_s11  ;;  %p1010_p13 = pneg %p1009_p9 }
 0x27d   : > { %s669_s28 = sshll.u32 %s242_s8, 4  ;;  %s670_s28 = int_to_ptr.vmem [resolvable:$true] %s669_s28 }
 0x27e   : > { %p1015_p4 = pnand %p1014_p3, %p1010_p13 }
 0x283   : > { %611 = vperm.xlu2 %914, %v608_v51  }
 0x2ad   : > { %v548_v52 = vpop.permute.xlu2 %547 }
 0x2b5   : > { %v582_v53 = vpop.permute.xlu2 %581 }
 0x2bd   : > { %v917_v54 = vpop.permute.xlu2 %916 }
 0x2be   : > { %v919_v55 = vunpack.i.h.bf16 %v917_v54  ;;  %v918_v56 = vunpack.i.l.bf16 %v917_v54 }
 0x2c0   : > { %v561_v58 = vsel %vm380_vm3, %v918_v56, %v919_v55 }
 0x2c1   : > { %v565_v59 = vsel %vm1239_vm4, %v561_v58, 0.0 }
 0x2c2   : > { %v605_v60 = vpack.c.bf16 %v565_v59, %v565_v59 }
 0x2c4   : > { %v618_v61 = vsel %vm1497_vm0, %v605_v60, 0  ;;  %vm1500_vm0 = vcmask 654336  }
 0x2c5   : > { %v592_v62 = vpop.permute.xlu1 %591  ;;  %626 = vmatpush.bf16.msra.mxu2 %v618_v61  ;;  %v932_v14 = vpop.permute.xlu2 %931  ;;  %vm1502_vm6 = vmmov %vm1500_vm0  ;;  %v607_v61 = vld [vmem:[%s1462_s2] sm:$0xf] }
 0x2c6   : > { %v560_v63 = vpop.permute.xlu0 %559  ;;  %v934_v22 = vunpack.i.h.bf16 %v932_v14  ;;  %v933_v23 = vunpack.i.l.bf16 %v932_v14 }
 0x2c7   : > { %v562_v0 = vsel %vm380_vm3, %v919_v55, %v560_v63  ;;  %vm1499_vm3 = vcmask 662528  }
 0x2c8   : > { %v566_v3 = vsel %vm1243_vm5, %v562_v0, 0.0  ;;  %vm1515_vm5 = vcmask 588800  }
 0x2c9   : > { %v606_v5 = vpack.c.bf16 %v566_v3, %v566_v3 }
 0x2cb   : > { %v621_v6 = vsel %vm1498_vm2, %v606_v5, 0  ;;  %vm1501_vm2 = vmmov %vm1499_vm3 }
 0x2cc   : > { %639 = vmatpush.bf16.msra.mxu3 %v621_v6 }
 0x2cd   : > { %v512_v8 = vpop.permute.xlu1 %511  ;;  %v947_v27 = vpop.permute.xlu2 %946 }
 0x2ce   : > { %v536_v9 = vpop.permute.xlu0 %535  ;;  %v949_v34 = vunpack.i.h.bf16 %v947_v27  ;;  %v948_v35 = vunpack.i.l.bf16 %v947_v27 }
 0x2d5   : > { %v922_v11 = vpop.permute.xlu1 %921  ;;  %v500_v56 = vpop.permute.xlu2 %499 }
 0x2d6   : > { %v524_v12 = vpop.permute.xlu0 %523  ;;  %v924_v15 = vunpack.i.h.bf16 %v922_v11  ;;  %v923_v10 = vunpack.i.l.bf16 %v922_v11 }
 0x2d8   : > { %v549_v13 = vsel %vm1499_vm3, %v923_v10, %v924_v15  ;;  %v550_v25 = vsel %vm1501_vm2, %v924_v15, %v548_v52  ;;  %vm1505_vm3 = vcmask 777216  }
 0x2d9   : > { %v538_v36 = vsel %vm1505_vm3, %v934_v22, %v536_v9 }
 0x2dd   : > { %v937_v16 = vpop.permute.xlu1 %936 }
 0x2de   : > { %v927_v17 = vpop.permute.xlu0 %926  ;;  %v939_v18 = vunpack.i.h.bf16 %v937_v16  ;;  %v938_v19 = vunpack.i.l.bf16 %v937_v16 }
 0x2df   : > { %v929_v20 = vunpack.i.h.bf16 %v927_v17  ;;  %v928_v21 = vunpack.i.l.bf16 %v927_v17 }
 0x2e0   : > { %v583_v32 = vsel %vm1503_vm8, %v938_v19, %v939_v18  ;;  %v584_v33 = vsel %vm1504_vm15, %v939_v18, %v582_v53  ;;  %vm1508_vm8 = vcmask 908288  }
 0x2e1   : > { %v593_v24 = vsel %vm1500_vm0, %v928_v21, %v929_v20  ;;  %v594_v26 = vsel %vm1502_vm6, %v929_v20, %v592_v62  ;;  %vm1506_vm0 = vmmov %vm1505_vm3  ;;  %v794_v41 = vpack.c.bf16 %v538_v36, %v584_v33  ;;  %vm1507_vm6 = vcmask 793600   ;;  %v612_v62 = vpop.permute.xlu2 %611 }
 0x2e2   : > { %v778_v28 = vpack.c.bf16 %v593_v24, %v549_v13  ;;  %v791_v31 = vpack.c.bf16 %v594_v26, %v550_v25  ;;  %v537_v37 = vsel %vm1506_vm0, %v933_v23, %v934_v22  ;;  %v526_v46 = vsel %vm1507_vm6, %v949_v34, %v524_v12  ;;  %vm1509_vm15 = vmmov %vm1507_vm6 }
 0x2e3   : > { %v781_v40 = vpack.c.bf16 %v537_v37, %v583_v32  ;;  %v525_v48 = vsel %vm1509_vm15, %v948_v35, %v949_v34  ;;  %vm1510_vm2 = vmmov %vm1508_vm8 }
 0x2e4   : > { %779 = vmatpush.bf16.msk.msra.mxu2 %vm1269_vm12, %v778_v28  ;;  %792 = vmatpush.bf16.msk.msra.mxu3 %vm1277_vm14, %v791_v31 }
 0x2e5   : > { %v952_v38 = vpop.permute.xlu1 %951 }
 0x2e6   : > { %v942_v39 = vpop.permute.xlu0 %941  ;;  %v954_v4 = vunpack.i.h.bf16 %v952_v38  ;;  %v953_v7 = vunpack.i.l.bf16 %v952_v38 }
 0x2e7   : > { %v944_v44 = vunpack.i.h.bf16 %v942_v39  ;;  %v943_v45 = vunpack.i.l.bf16 %v942_v39 }
 0x2e8   : > { %782 = vmatpush.bf16.msk.msra.mxu2 %vm1291_vm1, %v781_v40  ;;  %795 = vmatpush.bf16.msk.msra.mxu3 %vm1301_vm13, %v794_v41  ;;  %vm1511_vm13 = vcmask 924672   ;;  %vm1512_vm1 = vcmask 916480  }
 0x2e9   : > { %v513_v47 = vsel %vm1508_vm8, %v943_v45, %v944_v44  ;;  %v514_v49 = vsel %vm1510_vm2, %v944_v44, %v512_v8  ;;  %v501_v42 = vsel %vm1511_vm13, %v953_v7, %v954_v4  ;;  %vm1513_vm4 = vmmov %vm1511_vm13 }
 0x2ea   : > { %v784_v51 = vpack.c.bf16 %v525_v48, %v513_v47  ;;  %v797_v52 = vpack.c.bf16 %v526_v46, %v514_v49  ;;  %v502_v59 = vsel %vm1513_vm4, %v954_v4, %v500_v56  ;;  %vm1514_vm9 = vmmov %vm1512_vm1 }
 0x2ec   : > { %785 = vmatpush.bf16.msk.msra.mxu2 %vm757_vm11, %v784_v51  ;;  %798 = vmatpush.bf16.msk.msra.mxu3 %vm770_vm7, %v797_v52  ;;  %vm1516_vm7 = vmmov %vm1515_vm5 }
 0x2ed   : > { %v572_v58 = vpop.permute.xlu1 %571 }
 0x2ee   : > { %v957_v53 = vpop.permute.xlu0 %956 }
 0x2ef   : > { %v959_v54 = vunpack.i.h.bf16 %v957_v53  ;;  %v958_v55 = vunpack.i.l.bf16 %v957_v53 }
 0x2f1   : > { %v573_v29 = vsel %vm1512_vm1, %v958_v55, %v959_v54  ;;  %v574_v43 = vsel %vm1514_vm9, %v959_v54, %v572_v58 }
 0x2f2   : > { %v787_v60 = vpack.c.bf16 %v573_v29, %v501_v42  ;;  %v800_v30 = vpack.c.bf16 %v574_v43, %v502_v59 }
 0x2f4   : > { %788 = vmatpush.bf16.msk.msra.mxu2 %vm1269_vm12, %v787_v60  ;;  %801 = vmatpush.bf16.msk.msra.mxu3 %vm1277_vm14, %v800_v30 }
 0x2f7   : > { %789 = vmatmul.msk.bf16.vlgmr.msra.gmra.mxu2 %vm1515_vm5, %v607_v61  ;;  %802 = vmatmul.msk.bf16.vlgmr.msra.gmra.mxu3 %vm1516_vm7, %v607_v61 }
 0x37a   : > { %v632_v63 = vpop.f32.mrf.mxu2  ;;  %v645_v0 = vpop.f32.mrf.mxu3 }
 0x37b   : > { %v633_v50 = vadd.f32 %v632_v63, %v612_v62  ;;  %v646_v57 = vadd.f32 %v645_v0, %v612_v62 }
 0x37d   : > { %v649_v3 = vadd.f32 %v633_v50, %v1199_v1  ;;  %v650_v5 = vadd.f32 %v646_v57, %v1203_v2 }
 0x37f   : > { %v651_v6 = vmax.f32 %v649_v3, 0.0  ;;  %v652_v8 = vmax.f32 %v650_v5, 0.0 }
 0x381   : > { %653 = vst [vmem:[%s242_s8] sm:$0xff] %v651_v6 }
 0x382   : > { %654 = vst [vmem:[%s242_s8 + $0x8] sm:$0xff] %v652_v8  ;;  %v634_v9 = vpop.f32.mrf.mxu2  ;;  %v647_v11 = vpop.f32.mrf.mxu3 }
 0x383   : > { %1018 = shalt.err (!%p1015_p4)
}
 0x384   : > { %812 = dma.vmem_to_hbm [thread:$0]  (%p1152_p11), %s670_s28, 256, %s672_s9, %s656_s22  }
 0x385 PF: > { %s683_s7 = sand.u32 1, %s1045_s18   ;;  %p1517_p7 = scmp.ge.s32.totalorder %s1057_s21, 2 }
 0x386   : > { %s684_s16 = scalar_lea.sflag [#allocation5], %s683_s7 }
 0x387   : > { %p819_p5 = pnand %p1517_p7, %p1156_p12 }
 0x389   : > { %p820_p8 = pneg %p819_p5 }
 0x38b   : > { %1040 = dma.done.wait (%p820_p8), %s684_s16, 256  }
 0x38c   : > { %1042 = vsyncadd (%p820_p8), %s684_s16, 4294967040  ;;  %p18_p10 = scmp.ge.s32.totalorder %s1127_s24, 4   ;;  %s1518_s18 = smov %s1049_s19 }
 0x38d   : > { %s1519_s19 = smov %s1053_s20  ;;  %s1520_s20 = smov %s1139_s27 }
 0x38e   : > { %s1521_s21 = smov %s1127_s24  ;;  %20 = sbr.rel (!%p18_p10) target bundleno = 5 (0x5), region = 85 }
 0x393   :  { %690 = vsyncpa [#allocation4], 1 }
 0x394   :  { %692 = vsyncpa [#allocation4 + $0x1], 1 }
 0x395   :  { %693 = vsyncpa [#allocation5], 1 }
 0x396   :  { %695 = vsyncpa [#allocation5 + $0x1], 1 }

</bundles_post_ra>
